<compile_context>
chip_gen: v6e
topology: v6e:2x2x1
jax: 0.10.0
libtpu: 0.0.40
codegen_flags: <defaults>
</compile_context>

<pallas_src>
import functools

import jax
import jax.numpy as jnp
from jax.experimental import pallas as pl
from jax.experimental.pallas import tpu as pltpu

SPIKE_MIN = 0.0
SPIKE_MAX = 4.0
SPIKE_INV_NORM = 0.25  # 1 / Norm, folded in as a multiply (no divide in the kernel)

LANE_COLS = 1024        # lane-dense last dim (multiple of 128 -> unmasked stores)
MAX_BLOCK_ROWS = 512    # 512 x 1024 x 4B = 2 MiB per block


def multispike_kernel(x_ref, o_ref):
    # y = round(clamp(x, 0, 4)) * 0.25   (jnp.round == torch.round: half-to-even)
    x = x_ref[...]
    o_ref[...] = jnp.round(jnp.clip(x, SPIKE_MIN, SPIKE_MAX)) * SPIKE_INV_NORM


@jax.jit
def multispike_forward(x):
    orig_shape = x.shape
    orig_dtype = x.dtype
    total = x.size

    # Flatten (contiguous, free) and pad up to a whole number of (block_rows, 1024)
    # tiles.  Padding is harmless for an elementwise op and is sliced off afterwards.
    rows_needed = pl.cdiv(total, LANE_COLS)
    rows_padded = pl.cdiv(rows_needed, 8) * 8            # sublane multiple of 8
    block_rows = min(MAX_BLOCK_ROWS, rows_padded)        # still a multiple of 8
    num_blocks = pl.cdiv(rows_padded, block_rows)
    rows_padded = num_blocks * block_rows
    padded = rows_padded * LANE_COLS

    flat = jnp.ravel(x).astype(jnp.float32)
    if padded != total:
        flat = jnp.pad(flat, (0, padded - total))
    slab = flat.reshape(rows_padded, LANE_COLS)

    out = pl.pallas_call(
        multispike_kernel,
        out_shape=jax.ShapeDtypeStruct((rows_padded, LANE_COLS), jnp.float32),
        grid=(num_blocks,),
        in_specs=[pl.BlockSpec((block_rows, LANE_COLS), lambda i: (i, 0))],
        out_specs=pl.BlockSpec((block_rows, LANE_COLS), lambda i: (i, 0)),
        compiler_params=pltpu.CompilerParams(
            dimension_semantics=("parallel",)),
        cost_estimate=pl.CostEstimate(
            flops=4 * padded,                 # clip (2) + round + scale per element
            transcendentals=0,
            bytes_accessed=2 * padded * 4),   # one read + one write pass over HBM
    )(slab)

    return out.reshape(-1)[:total].reshape(orig_shape).astype(orig_dtype)


def multispike_reference(x):
    """Plain-JAX reference of MultiSpike.forward (min=0, max=4, Norm=4)."""
    xf = x.astype(jnp.float32)
    return (jnp.round(jnp.clip(xf, SPIKE_MIN, SPIKE_MAX)) / SPIKE_MAX).astype(x.dtype)


if __name__ == "__main__":
    # Small deterministic problem consistent with the module: B=2, C=4, H=W=16.
    B, C, H, W = 2, 4, 16, 16

    key = jax.random.PRNGKey(0)
    # Range chosen so the quantizer exercises both clamp boundaries and every level.
    x = jax.random.uniform(key, (B, C, H, W), jnp.float32, minval=-2.0, maxval=6.0)

    out = multispike_forward(x)
    out = jax.block_until_ready(out)

    ref = multispike_reference(x)
    assert out.shape == (B, C, H, W)
    assert out.dtype == x.dtype
    assert jnp.allclose(out, ref, rtol=1e-6, atol=1e-6), "mismatch vs reference"

    print("KERNEL_OK")
</pallas_src>

<mosaic_0001>
module attributes {stable_mosaic.version = 11 : i64} {
  func.func @multispike_kernel(%arg0: i32, %arg1: memref<8x1024xf32, #tpu.memory_space<vmem>>, %arg2: memref<8x1024xf32, #tpu.memory_space<vmem>>) attributes {dimension_semantics = [#tpu.dimension_semantics<parallel>], iteration_bounds = array<i64: 1>, scalar_prefetch = 0 : i64, scratch_operands = 0 : i64, tpu.core_type = #tpu.core_type<tc>, window_params = [{transform_indices = @transform_0, window_bounds = array<i64: 8, 1024>}, {transform_indices = @transform_1, window_bounds = array<i64: 8, 1024>}]} {
    %c0 = arith.constant 0 : index
    %c0_0 = arith.constant 0 : index
    %0 = vector.load %arg1[%c0, %c0_0] : memref<8x1024xf32, #tpu.memory_space<vmem>>, vector<8x1024xf32>
    %cst = arith.constant 0.000000e+00 : f32
    %cst_1 = arith.constant 4.000000e+00 : f32
    %1 = vector.broadcast %cst : f32 to vector<8x1024xf32>
    %2 = arith.maximumf %1, %0 : vector<8x1024xf32>
    %3 = vector.broadcast %cst_1 : f32 to vector<8x1024xf32>
    %4 = arith.minimumf %3, %2 : vector<8x1024xf32>
    %5 = math.roundeven %4 : vector<8x1024xf32>
    %cst_2 = arith.constant 2.500000e-01 : f32
    %6 = vector.broadcast %cst_2 : f32 to vector<8x1024xf32>
    %7 = arith.mulf %5, %6 : vector<8x1024xf32>
    %c0_3 = arith.constant 0 : index
    %c0_4 = arith.constant 0 : index
    %8 = vector.load %arg2[%c0_3, %c0_4] : memref<8x1024xf32, #tpu.memory_space<vmem>>, vector<8x1024xf32>
    tpu.vector_store %arg2[%c0_3, %c0_4], %7 {strides = array<i32>} : memref<8x1024xf32, #tpu.memory_space<vmem>>, vector<8x1024xf32>,
    return
  }
  func.func @transform_0(%arg0: i32) -> (i32, i32) {
    %c0_i32 = arith.constant 0 : i32
    %c0_i32_0 = arith.constant 0 : i32
    return %arg0, %c0_i32 : i32, i32
  }
  func.func @transform_1(%arg0: i32) -> (i32, i32) {
    %c0_i32 = arith.constant 0 : i32
    %c0_i32_0 = arith.constant 0 : i32
    return %arg0, %c0_i32 : i32, i32
  }
}

</mosaic_0001>

<bundles_post_ra>
// kernel: multispike_forward.1
= control target key start
LH: loop header
LB: loop body
LE: loop exit
PB: predicated region body
PF: predicated region fallthrough
CT: control target
= control target key end

     0   :  { %s218_s0 = inlined_call_operand.vmem [shape: f32[8,1024], index: 0, kind: input, shape index: {}]   ;;  %s219_s1 = inlined_call_operand.vmem [shape: f32[8,1024], index: 1, kind: output, shape index: {}]  }
   0x1   :  { %v8_v0 = vld [vmem:[%s218_s0] sm:$0xff]  ;;  %v9_v1 = vld [vmem:[%s218_s0 + $0x8] sm:$0xff]  ;;  %v10_v2 = vld [vmem:[%s218_s0 + $0x10] sm:$0xff] }
   0x2   :  { %v16_v3 = vmax.f32 %v8_v0, 0.0  ;;  %v17_v4 = vmax.f32 %v9_v1, 0.0  ;;  %v18_v5 = vmax.f32 %v10_v2, 0.0  ;;  %v11_v6 = vld [vmem:[%s218_s0 + $0x18] sm:$0xff]  ;;  %v12_v7 = vld [vmem:[%s218_s0 + $0x20] sm:$0xff]  ;;  %v13_v8 = vld [vmem:[%s218_s0 + $0x28] sm:$0xff] }
   0x3   :  { %v19_v9 = vmax.f32 %v11_v6, 0.0  ;;  %v20_v10 = vmax.f32 %v12_v7, 0.0  ;;  %v21_v11 = vmax.f32 %v13_v8, 0.0  ;;  %v14_v12 = vld [vmem:[%s218_s0 + $0x30] sm:$0xff]  ;;  %v15_v13 = vld [vmem:[%s218_s0 + $0x38] sm:$0xff] }
   0x4   :  { %v24_v14 = vmin.f32 %v16_v3, 4.0  ;;  %v25_v15 = vmin.f32 %v17_v4, 4.0  ;;  %v26_v16 = vmin.f32 %v18_v5, 4.0  ;;  %v22_v20 = vmax.f32 %v14_v12, 0.0 }
   0x5   :  { %v27_v17 = vmin.f32 %v19_v9, 4.0  ;;  %v28_v18 = vmin.f32 %v20_v10, 4.0  ;;  %v158_v19 = vmin.f32 %v21_v11, 4.0  ;;  %v23_v24 = vmax.f32 %v15_v13, 0.0 }
   0x6   :  { %v60_v21 = vand.u32 2147483647, %v24_v14  ;;  %v62_v22 = vcvt.f32.s32 %v24_v14  ;;  %v68_v23 = vand.u32 2147483647, %v25_v15  ;;  %v65_v25 = vand.u32 2147483648, %v24_v14 }
   0x7   :  { %v70_v26 = vcvt.f32.s32 %v25_v15  ;;  %v76_v27 = vand.u32 2147483647, %v26_v16  ;;  %v78_v28 = vcvt.f32.s32 %v26_v16  ;;  %v73_v32 = vand.u32 2147483648, %v25_v15 }
   0x8   :  { %vm160_vm0 = vcmp.lt.f32.partialorder %v60_v21, 8388608.0  ;;  %v63_v30 = vcvt.s32.f32 %v62_v22  ;;  %vm164_vm1 = vcmp.lt.f32.partialorder %v68_v23, 8388608.0  ;;  %v81_v35 = vand.u32 2147483648, %v26_v16 }
   0x9   :  { %v71_v33 = vcvt.s32.f32 %v70_v26  ;;  %v79_v34 = vcvt.s32.f32 %v78_v28  ;;  %v84_v36 = vand.u32 2147483647, %v27_v17  ;;  %vm168_vm2 = vcmp.lt.f32.partialorder %v76_v27, 8388608.0 }
   0xa   :  { %v64_v37 = vand.u32 2147483647, %v63_v30  ;;  %v86_v39 = vcvt.f32.s32 %v27_v17  ;;  %v92_v40 = vand.u32 2147483647, %v28_v18  ;;  %v89_v43 = vand.u32 2147483648, %v27_v17 }
   0xb   :  { %v72_v41 = vand.u32 2147483647, %v71_v33  ;;  %v80_v42 = vand.u32 2147483647, %v79_v34  ;;  %v94_v44 = vcvt.f32.s32 %v28_v18  ;;  %vm172_vm3 = vcmp.lt.f32.partialorder %v84_v36, 8388608.0 }
   0xc   :  { %v66_v45 = vor.u32 %v65_v25, %v64_v37  ;;  %v87_v47 = vcvt.s32.f32 %v86_v39  ;;  %vm176_vm4 = vcmp.lt.f32.partialorder %v92_v40, 8388608.0  ;;  %v97_v52 = vand.u32 2147483648, %v28_v18 }
   0xd   :  { %v74_v49 = vor.u32 %v73_v32, %v72_v41  ;;  %v82_v50 = vor.u32 %v81_v35, %v80_v42  ;;  %v95_v51 = vcvt.s32.f32 %v94_v44  ;;  %v100_v55 = vand.u32 2147483647, %v158_v19 }
   0xe   :  { %v67_v53 = vsel %vm160_vm0, %v66_v45, %v24_v14  ;;  %v88_v54 = vand.u32 2147483647, %v87_v47  ;;  %v102_v56 = vcvt.f32.s32 %v158_v19  ;;  %v105_v0 = vand.u32 2147483648, %v158_v19 }
   0xf   :  { %v40_v57 = vmul.f32 0.25, %v67_v53  ;;  %v75_v58 = vsel %vm164_vm1, %v74_v49, %v25_v15  ;;  %v83_v59 = vsel %vm168_vm2, %v82_v50, %v26_v16  ;;  %v96_v60 = vand.u32 2147483647, %v95_v51 }
  0x10   :  { %v41_v61 = vmul.f32 0.25, %v75_v58  ;;  %v42_v62 = vmul.f32 0.25, %v83_v59  ;;  %v90_v63 = vor.u32 %v89_v43, %v88_v54  ;;  %v103_v2 = vcvt.s32.f32 %v102_v56 }
  0x11   :  { %48 = vst [vmem:[%s219_s1] sm:$0xff] %v40_v57  ;;  %v98_v1 = vor.u32 %v97_v52, %v96_v60  ;;  %v30_v3 = vmin.f32 %v22_v20, 4.0  ;;  %v31_v4 = vmin.f32 %v23_v24, 4.0  ;;  %vm101_vm5 = vcmp.lt.f32.partialorder %v100_v55, 8388608.0 }
  0x12   :  { %49 = vst [vmem:[%s219_s1 + $0x8] sm:$0xff] %v41_v61  ;;  %50 = vst [vmem:[%s219_s1 + $0x10] sm:$0xff] %v42_v62  ;;  %v91_v5 = vsel %vm172_vm3, %v90_v63, %v27_v17  ;;  %v104_v8 = vand.u32 2147483647, %v103_v2 }
  0x13   :  { %v43_v6 = vmul.f32 0.25, %v91_v5  ;;  %v99_v7 = vsel %vm176_vm4, %v98_v1, %v28_v18  ;;  %v110_v10 = vcvt.f32.s32 %v30_v3  ;;  %v108_v12 = vand.u32 2147483647, %v30_v3 }
  0x14   :  { %v44_v9 = vmul.f32 0.25, %v99_v7  ;;  %v106_v11 = vor.u32 %v105_v0, %v104_v8  ;;  %v118_v13 = vcvt.f32.s32 %v31_v4  ;;  %v113_v15 = vand.u32 2147483648, %v30_v3 }
  0x15   :  { %51 = vst [vmem:[%s219_s1 + $0x18] sm:$0xff] %v43_v6  ;;  %v111_v14 = vcvt.s32.f32 %v110_v10  ;;  %v116_v16 = vand.u32 2147483647, %v31_v4  ;;  %v121_v20 = vand.u32 2147483648, %v31_v4  ;;  %vm109_vm6 = vcmp.lt.f32.partialorder %v108_v12, 8388608.0 }
  0x16   :  { %52 = vst [vmem:[%s219_s1 + $0x20] sm:$0xff] %v44_v9  ;;  %v107_v17 = vsel %vm101_vm5, %v106_v11, %v158_v19  ;;  %v119_v18 = vcvt.s32.f32 %v118_v13 }
  0x17   :  { %v45_v21 = vmul.f32 0.25, %v107_v17  ;;  %v112_v22 = vand.u32 2147483647, %v111_v14  ;;  %vm117_vm7 = vcmp.lt.f32.partialorder %v116_v16, 8388608.0 }
  0x18   :  { %v120_v23 = vand.u32 2147483647, %v119_v18 }
  0x19   :  { %53 = vst [vmem:[%s219_s1 + $0x28] sm:$0xff] %v45_v21  ;;  %v114_v24 = vor.u32 %v113_v15, %v112_v22 }
  0x1a   :  { %v122_v25 = vor.u32 %v121_v20, %v120_v23 }
  0x1b   :  { %v115_v26 = vsel %vm109_vm6, %v114_v24, %v30_v3 }
  0x1c   :  { %v46_v27 = vmul.f32 0.25, %v115_v26  ;;  %v123_v28 = vsel %vm117_vm7, %v122_v25, %v31_v4 }
  0x1d   :  { %v47_v29 = vmul.f32 0.25, %v123_v28 }
  0x1e   :  { %54 = vst [vmem:[%s219_s1 + $0x30] sm:$0xff] %v46_v27 }
  0x1f   :  { %55 = vst [vmem:[%s219_s1 + $0x38] sm:$0xff] %v47_v29 }

</bundles_post_ra>
